<compile_context>
chip_gen: v7x
topology: tpu7x:2x2x1
jax: 0.10.0
libtpu: 0.0.40
codegen_flags: <defaults>
</compile_context>

<pallas_src>
import jax
import jax.numpy as jnp
from jax import lax
from jax.experimental import pallas as pl
from jax.experimental.pallas import tpu as pltpu

_MIB = 1024 * 1024


def _vmem_capacity_bytes():
    try:
        return int(pltpu.get_tpu_info().vmem_capacity_bytes)
    except Exception:
        return 64 * _MIB  # conservative: v7x per-TensorCore VMEM


def _round_down(x, m):
    return (x // m) * m


def _round_up(x, m):
    return ((x + m - 1) // m) * m


def _group_factor(C, HW):
    """Smallest divisor g of C such that g*HW is a multiple of 128 (lane-dense
    rows after the free reshape (C, HW) -> (C//g, g*HW)).  1 if none exists."""
    if HW % 128 == 0:
        return 1
    for g in range(2, C + 1):
        if C % g == 0 and (g * HW) % 128 == 0:
            return g
    return 1


def _buffered_spec(block_shape, index_map, nbuf=None):
    """BlockSpec with optional deeper pipelining (falls back gracefully)."""
    if nbuf is not None and hasattr(pl, "Buffered"):
        try:
            return pl.BlockSpec(block_shape, index_map,
                                pipeline_mode=pl.Buffered(nbuf))
        except TypeError:
            pass
    return pl.BlockSpec(block_shape, index_map)


# --------------------------------------------------------------------------
# Kernels
# --------------------------------------------------------------------------
def _make_fused_kernel(C, HW, chunk, inv_hw):
    """Single pass per batch element: chunked pool -> gate -> chunked scale.

    The lane dim is processed in `chunk`-wide (128-multiple) slices so no
    whole-block f32 temp is materialized and x is never held live across the
    gate computation (keeps the fused path within v7x's 64 MiB VMEM)."""
    n_full = HW // chunk
    rem = HW - n_full * chunk

    def kernel(x_ref, w1_ref, w2_ref, o_ref, acc_ref):
        # ---- squeeze: per-channel sums accumulated in a (C, 1) f32 scratch ----
        acc_ref[...] = jnp.zeros_like(acc_ref)
        if n_full > 0:
            @pl.loop(0, n_full)
            def _pool(i):
                off = pl.multiple_of(i * chunk, chunk)
                acc_ref[...] += jnp.sum(x_ref[:, pl.ds(off, chunk)], axis=-1,
                                        keepdims=True, dtype=jnp.float32)
        if rem > 0:
            acc_ref[...] += jnp.sum(x_ref[:, pl.ds(n_full * chunk, rem)],
                                    axis=-1, keepdims=True, dtype=jnp.float32)
        pooled = acc_ref[...] * inv_hw  # (C, 1) f32

        # ---- excitation: tiny column-vector MXU matmuls (full-extent dims,
        #      legal on all generations; negligible FLOPs) ----
        h = jnp.maximum(
            jnp.dot(w1_ref[...], pooled, preferred_element_type=jnp.float32),
            0.0)
        gate = jax.nn.sigmoid(
            jnp.dot(w2_ref[...], h, preferred_element_type=jnp.float32))  # (C,1)
        # One downcast of the gate (intentional extra rounding for bf16 acts).
        gact = gate.astype(o_ref.dtype)

        # ---- scale: re-read x per chunk, store per chunk ----
        if n_full > 0:
            @pl.loop(0, n_full)
            def _scale(i):
                off = pl.multiple_of(i * chunk, chunk)
                o_ref[:, pl.ds(off, chunk)] = x_ref[:, pl.ds(off, chunk)] * gact
        if rem > 0:
            o_ref[:, pl.ds(n_full * chunk, rem)] = (
                x_ref[:, pl.ds(n_full * chunk, rem)] * gact)

    return kernel


def _make_pool_kernel(g, L, l_tile):
    """Split pass 1: per-tile partial channel sums (no resident accumulator;
    both grid axes are parallel).  g == 1: plain lane reduction.  g > 1:
    x_tile @ S^T on the MXU gives the segmented per-channel sums of the
    grouped lane-dense layout.  Only the ragged last tile is masked."""
    need_mask = (L % l_tile) != 0

    def _partial(x, st):
        if g == 1:
            return jnp.sum(x, axis=-1, keepdims=True, dtype=jnp.float32)
        return jnp.dot(x, st, preferred_element_type=jnp.float32)

    def kernel(x_ref, st_ref, o_ref):
        x = x_ref[...]
        st = st_ref[...]
        if not need_mask:
            o_ref[...] = _partial(x, st)
        else:
            t = pl.program_id(1)
            last = pl.num_programs(1) - 1

            @pl.when(t != last)
            def _full():
                o_ref[...] = _partial(x, st)

            @pl.when(t == last)  # mask only the ragged last tile
            def _ragged():
                pos = t * l_tile + lax.broadcasted_iota(jnp.int32, x.shape, 1)
                xm = jnp.where(pos < L, x, jnp.zeros_like(x))
                o_ref[...] = _partial(xm, st)

    return kernel


def _make_scale_kernel(g):
    """Split pass 2: lane-dense tiled scale."""
    if g == 1:
        def kernel(x_ref, g_ref, s_ref, o_ref):
            del s_ref
            o_ref[...] = x_ref[...] * g_ref[...]
    else:
        def kernel(x_ref, g_ref, s_ref, o_ref):
            # Broadcast the per-channel gate across its HW segment with one
            # tiny MXU matmul: (C_g, g) @ (g, l_tile) -> (C_g, l_tile).
            gb = jnp.dot(g_ref[...], s_ref[...],
                         preferred_element_type=o_ref.dtype)
            o_ref[...] = x_ref[...] * gb
    return kernel


# --------------------------------------------------------------------------
# Wrapper
# --------------------------------------------------------------------------
def senet_forward(x_nchw, w1, w2, *, force_split=False, max_l_tile=None,
                  donate_input=False):
    """SENet forward.

    x_nchw: (B, C, H, W) activations (NCHW, as in PyTorch), any float dtype.
    w1:     (C // r, C)  fc1 weight, PyTorch nn.Linear layout (out, in), no bias.
    w2:     (C, C // r)  fc2 weight, PyTorch nn.Linear layout (out, in), no bias.
    donate_input: alias x's HBM buffer to the output (caller must allow it).
    """
    B, C, H, W = x_nchw.shape
    HW = H * W
    Cr = w1.shape[0]
    assert w1.shape == (Cr, C) and w2.shape == (C, Cr)

    dtype = x_nchw.dtype
    itemsize = jnp.dtype(dtype).itemsize
    sub = 8 * max(1, 4 // itemsize)          # sublane packing: f32=8, bf16=16
    inv_hw = 1.0 / float(HW)
    x_flat = x_nchw.reshape(B, C, HW)        # free reshape (no relayout)

    vmem_cap = _vmem_capacity_bytes()
    vmem_limit = int(max(32 * _MIB, min(vmem_cap - 16 * _MIB, 100 * _MIB)))

    # ---- lane-density analysis ------------------------------------------------
    g = _group_factor(C, HW)
    dense_split = ((g * HW) % 128) == 0      # split path can be lane-dense
    hw_pad = _round_up(HW, 128)
    lane_fill = HW / float(hw_pad)

    # ---- fused path (x read once / written once -> 2x HBM traffic) ----
    c_pad = _round_up(C, sub)
    padded_block_bytes = c_pad * hw_pad * itemsize
    w_bytes = (w1.size * jnp.dtype(w1.dtype).itemsize
               + w2.size * jnp.dtype(w2.dtype).itemsize)
    # in + out blocks double-buffered + weights + (C,1) f32 scratch + slack.
    fused_est = 4 * padded_block_bytes + 2 * w_bytes + 4 * c_pad * 128 + 2 * _MIB
    use_fused = ((not force_split)
                 and B >= 2                              # both v7x cores busy
                 and fused_est <= (vmem_limit * 3) // 4
                 and (lane_fill >= 0.7 or not dense_split))

    if use_fused:
        chunk = _round_down(max((512 * 1024) // max(C, 1), 128), 128)
        chunk = max(128, min(chunk, 2048))
        out_flat = pl.pallas_call(
            _make_fused_kernel(C, HW, chunk, inv_hw),
            out_shape=jax.ShapeDtypeStruct((B, C, HW), dtype),
            grid_spec=pltpu.PrefetchScalarGridSpec(
                num_scalar_prefetch=0,
                grid=(B,),
                in_specs=[
                    pl.BlockSpec((pl.Squeezed(), C, HW), lambda b: (b, 0, 0)),
                    pl.BlockSpec(w1.shape, lambda b: (0, 0)),
                    pl.BlockSpec(w2.shape, lambda b: (0, 0)),
                ],
                out_specs=pl.BlockSpec((pl.Squeezed(), C, HW),
                                       lambda b: (b, 0, 0)),
                scratch_shapes=[pltpu.VMEM((C, 1), jnp.float32)],
            ),
            compiler_params=pltpu.CompilerParams(
                dimension_semantics=("parallel",),
                vmem_limit_bytes=vmem_limit,
            ),
            cost_estimate=pl.CostEstimate(
                flops=int(2 * B * C * HW + 4 * B * Cr * C),
                transcendentals=int(B * C),
                bytes_accessed=int(2 * B * C * HW * itemsize + w_bytes),
            ),
            input_output_aliases=({0: 0} if donate_input else {}),
        )(x_flat, w1, w2)
        return out_flat.reshape(B, C, H, W)

    # ======================= split path (3x HBM traffic) =======================
    C_g = C // g
    L = g * HW
    x_g = x_flat.reshape(B, C_g, L)          # free reshape: g channels per row

    # Lane tile: 128-multiple, sized from the chip's VMEM (no fixed 8 MiB cap),
    # and small enough that B * n_t gives both TensorCores work at small batch.
    tile_budget = max(2 * _MIB, vmem_limit // 8)
    c_g_pad = _round_up(C_g, sub)
    l_tile = _round_down(max(tile_budget // max(c_g_pad * itemsize, 1), 128), 128)
    l_tile = max(l_tile, 128)
    if max_l_tile is not None:
        l_tile = max(_round_down(min(l_tile, max_l_tile), 128), 128)
    target_nt = max(1, pl.cdiv(8, B))
    l_tile = min(l_tile, max(128, _round_up(pl.cdiv(L, target_nt), 128)))
    if L <= l_tile:
        l_tile = L                            # full extent is always legal
    n_t = pl.cdiv(L, l_tile)
    l_pad = n_t * l_tile

    # Segment one-hot S (g, L): S[j, l] = 1 iff lane l belongs to channel j of
    # its row.  Zero-padded to l_pad so the MXU pooling never sees garbage.
    seg = jnp.arange(L, dtype=jnp.int32) // HW
    s_mat = (seg[None, :] == jnp.arange(g, dtype=jnp.int32)[:, None]).astype(dtype)
    if l_pad > L:
        s_mat = jnp.pad(s_mat, ((0, 0), (0, l_pad - L)))
    s_t = s_mat.T                             # (l_pad, g)

    # ---- pass 1: per-tile partial channel sums (fully parallel grid) ----
    partials = pl.pallas_call(
        _make_pool_kernel(g, L, l_tile),
        out_shape=jax.ShapeDtypeStruct((B, n_t, C_g, g), jnp.float32),
        grid_spec=pltpu.PrefetchScalarGridSpec(
            num_scalar_prefetch=0,
            grid=(B, n_t),
            in_specs=[
                pl.BlockSpec((pl.Squeezed(), C_g, l_tile), lambda b, t: (b, 0, t)),
                pl.BlockSpec((l_tile, g), lambda b, t: (t, 0)),
            ],
            out_specs=pl.BlockSpec((pl.Squeezed(), pl.Squeezed(), C_g, g),
                                   lambda b, t: (b, t, 0, 0)),
        ),
        compiler_params=pltpu.CompilerParams(
            dimension_semantics=("parallel", "parallel"),
            vmem_limit_bytes=vmem_limit,
        ),
        cost_estimate=pl.CostEstimate(
            flops=int(2 * B * C * HW),
            transcendentals=0,
            bytes_accessed=int(B * C * HW * itemsize + 4 * B * n_t * C),
        ),
    )(x_g, s_t)

    # ---- excitation: batched GEMMs in plain JAX (off the reduction critical
    #      path; properly shaped for the MXU, weights not resident in-kernel) ----
    pooled = partials.sum(axis=1).reshape(B, C) * inv_hw          # (B, C) f32
    h = jnp.maximum(pooled @ w1.astype(jnp.float32).T, 0.0)       # (B, Cr)
    gate = jax.nn.sigmoid(h @ w2.astype(jnp.float32).T)           # (B, C) f32
    # Single downcast to activation dtype (intentional extra bf16 rounding).
    gate_g = gate.astype(dtype).reshape(B, C_g, g)

    # ---- pass 2: lane-dense tiled scale, fully parallel ----
    out_g = pl.pallas_call(
        _make_scale_kernel(g),
        out_shape=jax.ShapeDtypeStruct((B, C_g, L), dtype),
        grid_spec=pltpu.PrefetchScalarGridSpec(
            num_scalar_prefetch=0,
            grid=(B, n_t),
            in_specs=[
                _buffered_spec((pl.Squeezed(), C_g, l_tile),
                               lambda b, t: (b, 0, t),
                               nbuf=3 if n_t >= 3 else None),
                pl.BlockSpec((pl.Squeezed(), C_g, g), lambda b, t: (b, 0, 0)),
                pl.BlockSpec((g, l_tile), lambda b, t: (0, t)),
            ],
            out_specs=pl.BlockSpec((pl.Squeezed(), C_g, l_tile),
                                   lambda b, t: (b, 0, t)),
        ),
        compiler_params=pltpu.CompilerParams(
            dimension_semantics=("parallel", "parallel"),
            vmem_limit_bytes=vmem_limit,
        ),
        cost_estimate=pl.CostEstimate(
            flops=int((2 if g > 1 else 1) * B * C * HW),
            transcendentals=0,
            bytes_accessed=int(2 * B * C * HW * itemsize + B * C * itemsize),
        ),
        input_output_aliases=({0: 0} if donate_input else {}),
    )(x_g, gate_g, s_mat)

    return out_g.reshape(B, C, H, W)


# --------------------------------------------------------------------------
# Pure-JAX reference mirroring the PyTorch module (weights in (out, in) layout)
# --------------------------------------------------------------------------
def _reference(x, w1, w2):
    xf = x.astype(jnp.float32)
    y = jnp.mean(xf, axis=(2, 3))                 # (B, C)
    h = jnp.maximum(y @ w1.T, 0.0)                # (B, C//r)
    s = jax.nn.sigmoid(h @ w2.T)                  # (B, C)
    return xf * s[:, :, None, None]


if __name__ == "__main__":
    key = jax.random.PRNGKey(0)
    kx, k1, k2, kx2, kx3, kx4, kx5 = jax.random.split(key, 7)

    B, C, H, W = 2, 32, 16, 16
    reduction = 8
    Cr = C // reduction

    x = jax.random.normal(kx, (B, C, H, W), dtype=jnp.float32)
    # PyTorch nn.Linear layout: (out_features, in_features), no bias.
    w1 = jax.random.normal(k1, (Cr, C), dtype=jnp.float32) / jnp.sqrt(C)
    w2 = jax.random.normal(k2, (C, Cr), dtype=jnp.float32) / jnp.sqrt(Cr)
    ref = _reference(x, w1, w2)

    # 1) Auto path: HW = 256 (lane-dense), B = 2 -> fused single pass.
    out = jax.block_until_ready(senet_forward(x, w1, w2))
    assert out.shape == (B, C, H, W) and out.dtype == x.dtype
    assert jnp.allclose(out, ref, atol=1e-5, rtol=1e-5)

    # 2) Grouped split path: HW = 144 -> g = 8, L = 1152; l_tile = 256 gives a
    #    ragged (masked) last pooling tile and a Buffered(3) scale pass.
    x2 = jax.random.normal(kx2, (B, C, 12, 12), dtype=jnp.float32)
    out2 = jax.block_until_ready(
        senet_forward(x2, w1, w2, force_split=True, max_l_tile=256))
    assert jnp.allclose(out2, _reference(x2, w1, w2), atol=1e-5, rtol=1e-5)

    # 3) No lane-dense grouping exists (C = 4): g = 1 fallback, ragged tiles.
    C4, Cr4 = 4, 2
    w1s = jax.random.normal(k1, (Cr4, C4), dtype=jnp.float32) / jnp.sqrt(C4)
    w2s = jax.random.normal(k2, (C4, Cr4), dtype=jnp.float32) / jnp.sqrt(Cr4)
    x3 = jax.random.normal(kx3, (2, C4, 12, 12), dtype=jnp.float32)
    out3 = jax.block_until_ready(
        senet_forward(x3, w1s, w2s, force_split=True, max_l_tile=128))
    assert jnp.allclose(out3, _reference(x3, w1s, w2s), atol=1e-5, rtol=1e-5)

    # 4) B = 1 auto-selects the split path (keeps both v7x TensorCores busy).
    x4 = jax.random.normal(kx4, (1, C, 24, 24), dtype=jnp.float32)
    out4 = jax.block_until_ready(senet_forward(x4, w1, w2))
    assert jnp.allclose(out4, _reference(x4, w1, w2), atol=1e-5, rtol=1e-5)

    # 5) bf16 fused path with the chunked pool/scale loop (HW = 2304 > chunk).
    x5 = jax.random.normal(kx5, (2, C, 48, 48), dtype=jnp.bfloat16)
    out5 = jax.block_until_ready(senet_forward(x5, w1, w2))
    assert out5.dtype == jnp.bfloat16
    assert jnp.allclose(out5.astype(jnp.float32), _reference(x5, w1, w2),
                        atol=2e-2, rtol=2e-2)

    # 6) bf16 grouped split path (gate stored in the activation dtype).
    x6 = x2.astype(jnp.bfloat16)
    out6 = jax.block_until_ready(
        senet_forward(x6, w1, w2, force_split=True, max_l_tile=256))
    assert out6.dtype == jnp.bfloat16
    assert jnp.allclose(out6.astype(jnp.float32), _reference(x6, w1, w2),
                        atol=2e-2, rtol=2e-2)

    print("KERNEL_OK")
</pallas_src>

<mosaic_0001>
module attributes {stable_mosaic.version = 11 : i64} {
  func.func @kernel(%arg0: i32, %arg1: memref<1x32x256xf32, #tpu.memory_space<vmem>>, %arg2: memref<4x32xf32, #tpu.memory_space<vmem>>, %arg3: memref<32x4xf32, #tpu.memory_space<vmem>>, %arg4: memref<1x32x256xf32, #tpu.memory_space<vmem>>, %arg5: memref<32x1xf32, #tpu.memory_space<vmem>>) attributes {dimension_semantics = [#tpu.dimension_semantics<parallel>], iteration_bounds = array<i64: 2>, scalar_prefetch = 0 : i64, scratch_operands = 1 : i64, tpu.core_type = #tpu.core_type<tc>, window_params = [{transform_indices = @transform_0, window_bounds = array<i64: 1, 32, 256>}, {pipeline_mode = #tpu.pipeline_mode<synchronous>, transform_indices = @transform_1, window_bounds = array<i64: 4, 32>}, {pipeline_mode = #tpu.pipeline_mode<synchronous>, transform_indices = @transform_2, window_bounds = array<i64: 32, 4>}, {transform_indices = @transform_3, window_bounds = array<i64: 1, 32, 256>}]} {
    %cst = arith.constant 0.000000e+00 : f32
    %0 = vector.broadcast %cst : f32 to vector<32x1xf32>
    %c0 = arith.constant 0 : index
    %c0_0 = arith.constant 0 : index
    %1 = vector.load %arg5[%c0, %c0_0] : memref<32x1xf32, #tpu.memory_space<vmem>>, vector<32x1xf32>
    tpu.vector_store %arg5[%c0, %c0_0], %0 {strides = array<i32>} : memref<32x1xf32, #tpu.memory_space<vmem>>, vector<32x1xf32>,
    %c0_1 = arith.constant 0 : index
    %c0_2 = arith.constant 0 : index
    %2 = vector.load %arg5[%c0_1, %c0_2] : memref<32x1xf32, #tpu.memory_space<vmem>>, vector<32x1xf32>
    %c0_3 = arith.constant 0 : index
    %c0_4 = arith.constant 0 : index
    %c0_5 = arith.constant 0 : index
    %3 = vector.load %arg1[%c0_3, %c0_4, %c0_5] : memref<1x32x256xf32, #tpu.memory_space<vmem>>, vector<1x32x256xf32>
    %4 = vector.shape_cast %3 : vector<1x32x256xf32> to vector<32x256xf32>
    %cst_6 = arith.constant dense<0.000000e+00> : vector<32xf32>
    %5 = vector.multi_reduction <add>, %4, %cst_6 [1] : vector<32x256xf32> to vector<32xf32>
    %6 = vector.shape_cast %5 : vector<32xf32> to vector<32x1xf32>
    %7 = arith.addf %2, %6 : vector<32x1xf32>
    %c0_7 = arith.constant 0 : index
    %c0_8 = arith.constant 0 : index
    %8 = vector.load %arg5[%c0_7, %c0_8] : memref<32x1xf32, #tpu.memory_space<vmem>>, vector<32x1xf32>
    tpu.vector_store %arg5[%c0_7, %c0_8], %7 {strides = array<i32>} : memref<32x1xf32, #tpu.memory_space<vmem>>, vector<32x1xf32>,
    %c0_9 = arith.constant 0 : index
    %c0_10 = arith.constant 0 : index
    %9 = vector.load %arg5[%c0_9, %c0_10] : memref<32x1xf32, #tpu.memory_space<vmem>>, vector<32x1xf32>
    %cst_11 = arith.constant 3.906250e-03 : f32
    %10 = vector.broadcast %cst_11 : f32 to vector<32x1xf32>
    %11 = arith.mulf %9, %10 : vector<32x1xf32>
    %c0_12 = arith.constant 0 : index
    %c0_13 = arith.constant 0 : index
    %12 = vector.load %arg2[%c0_12, %c0_13] : memref<4x32xf32, #tpu.memory_space<vmem>>, vector<4x32xf32>
    %cst_14 = arith.constant dense<0.000000e+00> : vector<4x1xf32>
    %13 = tpu.matmul %12, %11, %cst_14 {dimension_numbers = #tpu.dot_dimension_numbers<[1], [0], [0], [1], [0, 0, 1, 1], [], []>} : vector<4x32xf32>, vector<32x1xf32>, vector<4x1xf32> -> vector<4x1xf32>
    %cst_15 = arith.constant 0.000000e+00 : f32
    %14 = vector.broadcast %cst_15 : f32 to vector<4x1xf32>
    %15 = arith.maximumf %13, %14 : vector<4x1xf32>
    %c0_16 = arith.constant 0 : index
    %c0_17 = arith.constant 0 : index
    %16 = vector.load %arg3[%c0_16, %c0_17] : memref<32x4xf32, #tpu.memory_space<vmem>>, vector<32x4xf32>
    %cst_18 = arith.constant dense<0.000000e+00> : vector<32x1xf32>
    %17 = tpu.matmul %16, %15, %cst_18 {dimension_numbers = #tpu.dot_dimension_numbers<[1], [0], [0], [1], [0, 0, 1, 1], [], []>} : vector<32x4xf32>, vector<4x1xf32>, vector<32x1xf32> -> vector<32x1xf32>
    %18 = arith.negf %17 : vector<32x1xf32>
    %19 = math.exp %18 : vector<32x1xf32>
    %cst_19 = arith.constant 1.000000e+00 : f32
    %20 = vector.broadcast %cst_19 : f32 to vector<32x1xf32>
    %21 = arith.addf %20, %19 : vector<32x1xf32>
    %22 = arith.divf %20, %21 : vector<32x1xf32>
    %c0_20 = arith.constant 0 : index
    %c0_21 = arith.constant 0 : index
    %c0_22 = arith.constant 0 : index
    %23 = vector.load %arg1[%c0_20, %c0_21, %c0_22] : memref<1x32x256xf32, #tpu.memory_space<vmem>>, vector<1x32x256xf32>
    %24 = vector.shape_cast %23 : vector<1x32x256xf32> to vector<32x256xf32>
    %25 = vector.broadcast %22 : vector<32x1xf32> to vector<32x256xf32>
    %26 = arith.mulf %24, %25 : vector<32x256xf32>
    %c0_23 = arith.constant 0 : index
    %c0_24 = arith.constant 0 : index
    %c0_25 = arith.constant 0 : index
    %27 = vector.load %arg4[%c0_23, %c0_24, %c0_25] : memref<1x32x256xf32, #tpu.memory_space<vmem>>, vector<1x32x256xf32>
    %28 = vector.shape_cast %27 : vector<1x32x256xf32> to vector<32x256xf32>
    %29 = vector.shape_cast %26 : vector<32x256xf32> to vector<1x32x256xf32>
    tpu.vector_store %arg4[%c0_23, %c0_24, %c0_25], %29 {strides = array<i32>} : memref<1x32x256xf32, #tpu.memory_space<vmem>>, vector<1x32x256xf32>,
    return
  }
  func.func @transform_0(%arg0: i32) -> (i32, i32, i32) {
    %c0_i32 = arith.constant 0 : i32
    %c0_i32_0 = arith.constant 0 : i32
    %c0_i32_1 = arith.constant 0 : i32
    return %arg0, %c0_i32, %c0_i32_0 : i32, i32, i32
  }
  func.func @transform_1(%arg0: i32) -> (i32, i32) {
    %c0_i32 = arith.constant 0 : i32
    %c0_i32_0 = arith.constant 0 : i32
    %c0_i32_1 = arith.constant 0 : i32
    return %c0_i32, %c0_i32_0 : i32, i32
  }
  func.func @transform_2(%arg0: i32) -> (i32, i32) {
    %c0_i32 = arith.constant 0 : i32
    %c0_i32_0 = arith.constant 0 : i32
    %c0_i32_1 = arith.constant 0 : i32
    return %c0_i32, %c0_i32_0 : i32, i32
  }
  func.func @transform_3(%arg0: i32) -> (i32, i32, i32) {
    %c0_i32 = arith.constant 0 : i32
    %c0_i32_0 = arith.constant 0 : i32
    %c0_i32_1 = arith.constant 0 : i32
    return %arg0, %c0_i32, %c0_i32_0 : i32, i32, i32
  }
}

</mosaic_0001>

<bundles_post_ra>
// kernel: tpu_custom_call.1
= control target key start
LH: loop header
LB: loop body
LE: loop exit
PB: predicated region body
PF: predicated region fallthrough
CT: control target
= control target key end

     0   :  { %8 = vsyncpa [#allocation4], 0  ;;  %s1053_s0 = inlined_call_operand.hbm [shape: f32[2,32,256], index: 0, kind: input, shape index: {}]   ;;  %s1054_s1 = inlined_call_operand.vmem [shape: f32[4,32], index: 1, kind: input, shape index: {}]   ;;  %s1055_s2 = inlined_call_operand.vmem [shape: f32[32,4], index: 2, kind: input, shape index: {}]   ;;  %s1056_s3 = inlined_call_operand.hbm [shape: f32[2,32,256], index: 3, kind: output, shape index: {}]  }
   0x1   :  { %10 = vsyncpa [#allocation4 + $0x1], 0 }
   0x2   :  { %11 = vsyncpa [#allocation5], 0 }
   0x3   :  { %13 = vsyncpa [#allocation5 + $0x1], 0  ;;  %s832_s12 = smov 0   ;;  %s834_s13 = smov 0  }
   0x4   :  { %s836_s14 = smov 0   ;;  %s838_s15 = smov 0  }
   0x5 LB: > { %s853_s16 = sadd.s32 4294967295, %s800_s15   ;;  %s571_s17 = sadd.s32 4294967294, %s800_s15   ;;  %s800_s15 = sphi %s838_s15, %s1069_s15   ;;  %s796_s14 = sphi %s836_s14, %s1068_s14   ;;  %s792_s13 = sphi %s834_s13, %s1067_s13   ;;  %s788_s12 = sphi %s832_s12, %s1066_s12  }
   0x6   : > { %s857_s18 = sadd.s32 1, %s800_s15   ;;  %s26_s19 = sadd.s32 1, %s796_s14 }
   0x7   : > { %s23_s20 = ssub.s32 %s800_s15, %s857_s18  ;;  %p33_p0 = scmp.ne.s32.totalorder %s796_s14, %s792_s13 }
   0x8   : > { %p24_p1 = scmp.eq.s32.totalorder %s23_s20, 0  ;;  %p34_p2 = scmp.eq.s32.totalorder %s800_s15, 0 }
   0x9   : > { %p39_p3 = scmp.ne.s32.totalorder %s792_s13, %s788_s12  ;;  %p40_p4 = scmp.eq.s32.totalorder %s853_s16, 0 }
   0xa   : > { %s869_s21 = scalar_select %p24_p1, %s796_s14, %s26_s19  }
   0xb   : > { %p871_p5 = por %p34_p2, %p33_p0  ;;  %p875_p6 = por %p40_p4, %p39_p3 }
   0xc   : > { %p105_p7 = scmp.eq.s32.totalorder %s853_s16, 1  ;;  %p111_p8 = scmp.eq.s32.totalorder %s571_s17, 1 }
   0xd   : > { %p644_p10 = scmp.lt.s32.totalorder %s800_s15, 2  ;;  %s137_s26 = sand.u32 1, %s796_s14  }
   0xe   : > { %p882_p11 = por %p105_p7, %p33_p0  ;;  %p886_p12 = por %p111_p8, %p39_p3 }
   0xf   : > { %s595_s27 = sshll.u32 %s800_s15, 10  ;;  %s574_s28 = sshll.u32 %s137_s26, 6 }
  0x10   : > { %s1060_s24 = scalar_select %p882_p11, 1, 0 }
  0x11   : > { %s1061_s25 = scalar_select %p886_p12, 1, 0 }
  0x12   : > { %s895_s4 = scalar_lea.hbm %s1053_s0, %s595_s27  ;;  %s141_s5 = scalar_lea.vmem [#allocation3], %s574_s28 }
  0x13   : > { %s148_s6 = sshll.u32 %s141_s5, 4  ;;  %p899_p13 = pnand %p644_p10, %p871_p5  ;;  %s903_s6 = int_to_ptr.vmem [resolvable:$true] %s148_s6 }
  0x14   : > { %s905_s8 = scalar_lea.sflag [#allocation4], %s137_s26  ;;  %s704_s9 = scalar_lea.hbm %s895_s4, 1024 }
  0x15   : > { %p705_p0 = scmp.ne.s32.totalorder %s895_s4, %s704_s9  ;;  %p706_p1 = pneg %p899_p13 }
  0x16   : > { %s709_s17 = scalar_lea.hbm %s1053_s0, 2048  ;;  %p710_p4 = scmp.lt.u32.totalorder %s895_s4, %s1053_s0 }
  0x17   : > { %p707_p2 = pnand %p706_p1, %p705_p0  ;;  %p711_p5 = scmp.lt.u32.totalorder %s709_s17, %s704_s9 }
  0x18   : > { %p713_p8 = scmp.lt.u32.totalorder %s704_s9, %s895_s4 }
  0x19   : > { %p708_p3 = pneg %p707_p2  ;;  %p712_p7 = por %p711_p5, %p710_p4 }
  0x1b   : > { %p714_p10 = por %p713_p8, %p712_p7 }
  0x1d   : > { %p715_p9 = pnand %p714_p10, %p708_p3 }
  0x1f   : > { %718 = shalt.err (!%p715_p9)
}
  0x20   : > { %s719_s22 = scalar_lea.vmem %s903_s6, 1024  ;;  %s802_s26 = smov [#allocation3]  }
  0x21   : > { %p720_p0 = scmp.ne.s32.totalorder %s903_s6, %s719_s22  ;;  %s724_s27 = sshll.u32 %s802_s26, 4  ;;  %s725_s27 = int_to_ptr.vmem [resolvable:$false] %s724_s27 }
  0x22   : > { %s726_s28 = scalar_lea.vmem %s725_s27, 2048  ;;  %p727_p11 = scmp.lt.s32.totalorder %s903_s6, %s725_s27 }
  0x23   : > { %p722_p2 = pnand %p720_p0, %p706_p1  ;;  %p728_p4 = scmp.lt.s32.totalorder %s726_s28, %s719_s22 }
  0x25   : > { %p723_p12 = pneg %p722_p2  ;;  %p729_p5 = por %p728_p4, %p727_p11 }
  0x27   : > { %p730_p7 = pnand %p729_p5, %p723_p12 }
  0x29   : > { %733 = shalt.err (!%p730_p7)
}
  0x2a   : > { %s803_s29 = smov 256   ;;  %s804_s30 = smov 16  }
  0x2b   : > { %639 = dma.hbm_to_vmem [thread:$0]  (!%p899_p13), %s895_s4, 1024, %s903_s6, %s905_s8, %s803_s29, %s803_s29, %s804_s30  }
  0x2c   : > { %p577_p9 = scmp.ge.s32.totalorder %s800_s15, 1  ;;  %p156_p1 = scmp.lt.s32.totalorder %s800_s15, 3 }
  0x2e   : > { %p157_p3 = pnand %p577_p9, %p156_p1 }
  0x2f   : > { %s936_s5 = sand.u32 (!%p157_p3), 1, %s792_s13  }
  0x30   : > { %160 = sbr.rel (%p157_p3) target bundleno = 835 (0x343), region = 32  ;;  %s578_s9 = sshll.u32 (!%p157_p3), %s936_s5, 6 }
  0x31   : > { %s163_s10 = scalar_lea.sflag (!%p157_p3), [#allocation4], %s936_s5  ;;  %s166_s11 = scalar_lea.vmem (!%p157_p3), [#allocation3], %s578_s9 }
  0x37   : > { %779 = dma.done.wait (%p875_p6), %s163_s10, 1024  }
  0x38   : > { %781 = vsyncadd (%p875_p6), %s163_s10, 4294966272  ;;  %vm189_vm0 = vcmask 7168   ;;  %v805_v0 = vmov 0.0   ;;  %v950_v1 = vld [vmem:[%s166_s11 + $0x20] sm:$0xff]  ;;  %v952_v2 = vld [vmem:[%s166_s11 + $0x28] sm:$0xff]  ;;  %v806_v13 = vmov 0.0|0.0  }
  0x39   : > { %192 = vst.msk [vmem:[#allocation2 + $0x10] sm:$0xff] %vm189_vm0, %v805_v0  ;;  %190 = vst.msk [vmem:[#allocation2] sm:$0xff] %vm189_vm0, %v805_v0  ;;  %v954_v3 = vld [vmem:[%s166_s11] sm:$0xff]  ;;  %v212_v4 = vadd.f32 %v952_v2, %v950_v1  ;;  %v958_v5 = vld [vmem:[%s166_s11 + $0x8] sm:$0xff]  ;;  %626 = vmatprep.subr.bf16.mxu0 %v806_v13  ;;  %vm807_vm1 = vmmov 0   ;;  %vm235_vm2 = vcmask 261120  }
  0x3a   : > { %191 = vst.msk [vmem:[#allocation2 + $0x8] sm:$0xff] %vm189_vm0, %v805_v0  ;;  %193 = vst.msk [vmem:[#allocation2 + $0x18] sm:$0xff] %vm189_vm0, %v805_v0  ;;  %v960_v6 = vld [vmem:[%s166_s11 + $0x30] sm:$0xff]  ;;  %v962_v7 = vld [vmem:[%s166_s11 + $0x38] sm:$0xff]  ;;  %v206_v8 = vadd.f32 %v958_v5, %v954_v3  ;;  %615 = vmatprep.mubr.msk.f32.mxu0 %vm807_vm1, %v805_v0  ;;  %vm314_vm3 = vcmask 31744   ;;  %vm327_vm4 = vcmask 1043456  }
  0x3b   : > { %v966_v9 = vld [vmem:[%s166_s11 + $0x10] sm:$0xff]  ;;  %v968_v10 = vld [vmem:[%s166_s11 + $0x18] sm:$0xff]  ;;  %213 = vadd.xlane.f32.xlu1 %v212_v4  ;;  %v215_v11 = vadd.f32 %v962_v7, %v960_v6  ;;  %v234_v36 = vld [vmem:[%s1054_s1] sm:$0xf]  ;;  %v808_v44 = vmov 0   ;;  %s188_s27 = scalar_lea.vmem [#allocation6], %s578_s9 }
  0x3c   : > { %207 = vadd.xlane.f32.xlu0 %v206_v8  ;;  %v209_v12 = vadd.f32 %v968_v10, %v966_v9  ;;  %v310_v37 = vld [vmem:[%s1055_s2] sm:$0xff]  ;;  %v311_v41 = vld [vmem:[%s1055_s2 + $0x8] sm:$0xff]  ;;  %v312_v42 = vld [vmem:[%s1055_s2 + $0x10] sm:$0xff]  ;;  %687 = vset.pattern.permute.xlu1 %v808_v44  ;;  %s498_s28 = sshll.u32 %s188_s27, 4  ;;  %s596_s29 = sshll.u32 %s853_s16, 10  ;;  %s1002_s28 = int_to_ptr.vmem [resolvable:$true] %s498_s28 }
  0x3d   : > { %620 = vmatprep.mubr.msk.f32.mxu1 %vm314_vm3, %v310_v37  ;;  %v313_v43 = vld [vmem:[%s1055_s2 + $0x18] sm:$0xff]  ;;  %686 = vset.pattern.permute.xlu0 %v808_v44  ;;  %s1007_s10 = scalar_lea.hbm %s1056_s3, %s596_s29  ;;  %s485_s16 = scalar_lea.sflag [#allocation5], %s936_s5 }
  0x3e   : > { %s734_s11 = scalar_lea.vmem %s1002_s28, 1024  ;;  %p1063_p11 = scmp.ne.s32.totalorder %s1060_s24, 0 }
  0x3f   : > { %216 = vadd.xlane.f32.xlu1 %v215_v11  ;;  %p735_p6 = scmp.ne.s32.totalorder %s1002_s28, %s734_s11  ;;  %s809_s23 = smov [#allocation6]  }
  0x40   : > { %210 = vadd.xlane.f32.xlu0 %v209_v12  ;;  %v196_v14 = vld [vmem:[#allocation2 + $0x10] sm:$0xff]  ;;  %v194_v15 = vld [vmem:[#allocation2] sm:$0xff]  ;;  %s738_s4 = sshll.u32 %s809_s23, 4  ;;  %s739_s4 = int_to_ptr.vmem [resolvable:$false] %s738_s4 }
  0x41   : > { %v197_v20 = vld [vmem:[#allocation2 + $0x18] sm:$0xff]  ;;  %v195_v21 = vld [vmem:[#allocation2 + $0x8] sm:$0xff]  ;;  %p736_p12 = pnand %p735_p6, %p1063_p11  ;;  %s740_s6 = scalar_lea.vmem %s739_s4, 2048 }
  0x42   : > { %p741_p8 = scmp.lt.s32.totalorder %s1002_s28, %s739_s4  ;;  %p742_p10 = scmp.lt.s32.totalorder %s740_s6, %s734_s11 }
  0x43   : > { %p737_p13 = pneg %p736_p12 }
  0x44   : > { %p743_p0 = por %p742_p10, %p741_p8 }
  0x46   : > { %p744_p2 = pnand %p743_p0, %p737_p13 }
  0xc8   : > { %v214_v16 = vpop.xlane.xlu1 %213 }
  0xc9   : > { %v220_v17 = vadd.f32 %v214_v16, %v196_v14  ;;  %v208_v18 = vpop.xlane.xlu0 %207 }
  0xca   : > { %v218_v19 = vadd.f32 %v208_v18, %v194_v15 }
  0xcb   : > { %224 = vst.msk [vmem:[#allocation2 + $0x10] sm:$0xff] %vm189_vm0, %v220_v17 }
  0xcc   : > { %222 = vst.msk [vmem:[#allocation2] sm:$0xff] %vm189_vm0, %v218_v19  ;;  %v217_v22 = vpop.xlane.xlu1 %216 }
  0xcd   : > { %v221_v23 = vadd.f32 %v217_v22, %v197_v20  ;;  %v211_v24 = vpop.xlane.xlu0 %210 }
  0xce   : > { %v219_v25 = vadd.f32 %v211_v24, %v195_v21 }
  0xcf   : > { %225 = vst.msk [vmem:[#allocation2 + $0x18] sm:$0xff] %vm189_vm0, %v221_v23 }
  0xd0   : > { %223 = vst.msk [vmem:[#allocation2 + $0x8] sm:$0xff] %vm189_vm0, %v219_v25 }
  0xd2   : > { %v228_v28 = vld [vmem:[#allocation2 + $0x10] sm:$0xff] }
  0xd3   : > { %v226_v26 = vld [vmem:[#allocation2] sm:$0xff]  ;;  %v232_v33 = vmul.f32 0.00390625, %v228_v28 }
  0xd4   : > { %v230_v30 = vmul.f32 0.00390625, %v226_v26 }
  0xd6   : > { %v229_v29 = vld [vmem:[#allocation2 + $0x18] sm:$0xff] }
  0xd7   : > { %v227_v27 = vld [vmem:[#allocation2 + $0x8] sm:$0xff]  ;;  %v233_v34 = vmul.f32 0.00390625, %v229_v29 }
  0xd8   : > { %v231_v31 = vmul.f32 0.00390625, %v227_v27 }
  0xd9   : > { %v630_v35 = vpack.c.bf16 %v233_v34, %v232_v33 }
  0xda   : > { %v627_v32 = vpack.c.bf16 %v231_v31, %v230_v30 }
  0xdc   : > { %628 = vmatpush3.bf16.msra.mxu0 %v627_v32 }
  0xdd   : > { %629 = vmatprep.subr.bf16.mxu0 %v806_v13 }
  0xe0   : > { %631 = vmatpush3.bf16.msra.mxu0 %v630_v35 }
  0xe3   : > { %616 = vmatmul.mubr.msk.f32.vlgmr.msra.gmra.mrb[0].mxu0 %vm235_vm2, %v234_v36 }
 0x1b6   : > { %v305_v38 = vpop.f32.mrb[0].mxu0 }
 0x1b7   : > { %v309_v39 = vmax.f32 %v305_v38, 0.0  ;;  %v617_v40 = vpop.f32.mrb[1].mxu0 }
 0x1b9   : > { %618 = vmatprep.subr.msk.mxu1 %vm327_vm4, %v309_v39 }
 0x1ba   : > { %619 = vmatpush3.msk.msra.mxu1 %vm327_vm4, %v309_v39 }
 0x1bb   : > { %621 = vmatmul.mubr.msk.f32.vlgmr.msra.gmra.mrb[0].mxu1 %vm314_vm3, %v311_v41 }
 0x1bc   : > { %623 = vmatprep.mubr.msk.f32.mxu1 %vm314_vm3, %v312_v42 }
 0x1bf   : > { %624 = vmatmul.mubr.msk.f32.gmra.mrb[2].mxu1 %vm314_vm3, %v313_v43 }
 0x28e   : > { %v622_v45 = vpop.f32.mrb[0].mxu1 }
 0x28f   : > { %v587_v46 = vmul.f32 -1.442695, %v622_v45  ;;  %v397_v47 = vpop.f32.mrb[1].mxu1 }
 0x290   : > { %v586_v48 = vmul.f32 -1.442695, %v397_v47 }
 0x291   : > { %688 = vpow2.f32 %v587_v46 }
 0x292   : > { %690 = vpow2.f32 %v586_v48  ;;  %v625_v49 = vpop.f32.mrb[2].mxu1 }
 0x293   : > { %v589_v50 = vmul.f32 -1.442695, %v625_v49  ;;  %v407_v51 = vpop.f32.mrb[3].mxu1 }
 0x294   : > { %v588_v52 = vmul.f32 -1.442695, %v407_v51 }
 0x295   : > { %692 = vpow2.f32 %v589_v50 }
 0x296   : > { %694 = vpow2.f32 %v588_v52 }
 0x29b   : > { %v689_v53 = vpop.eup %688 }
 0x29c   : > { %v691_v54 = vpop.eup %690  ;;  %v429_v55 = vadd.f32 1.0, %v689_v53 }
 0x29d   : > { %v428_v56 = vadd.f32 1.0, %v691_v54 }
 0x29e   : > { %696 = vrcp.f32 %v429_v55 }
 0x29f   : > { %v693_v57 = vpop.eup %692  ;;  %698 = vrcp.f32 %v428_v56 }
 0x2a0   : > { %v695_v58 = vpop.eup %694  ;;  %v431_v60 = vadd.f32 1.0, %v693_v57 }
 0x2a1   : > { %v430_v59 = vadd.f32 1.0, %v695_v58 }
 0x2a3   : > { %700 = vrcp.f32 %v430_v59 }
 0x2a4   : > { %702 = vrcp.f32 %v431_v60 }
 0x2a8   : > { %v697_v61 = vpop.eup %696 }
 0x2a9   : > { %v699_v62 = vpop.eup %698  ;;  %455 = vperm.xlu1 %687, %v697_v61  }
 0x2aa   : > { %450 = vperm.xlu0 %686, %v699_v62  }
 0x2ad   : > { %v701_v63 = vpop.eup %700 }
 0x2ae   : > { %460 = vperm.xlu1 %687, %v701_v63   ;;  %v703_v0 = vpop.eup %702 }
 0x2b2   : > { %465 = vperm.xlu1 %687, %v703_v0  }
 0x328   : > { %v456_v4 = vpop.permute.xlu1 %455 }
 0x329   : > { %v470_v8 = vmul.f32 %v456_v4, %v966_v9  ;;  %v471_v11 = vmul.f32 %v456_v4, %v968_v10  ;;  %v451_v12 = vpop.permute.xlu0 %450 }
 0x32a   : > { %v468_v13 = vmul.f32 %v451_v12, %v954_v3  ;;  %v469_v14 = vmul.f32 %v451_v12, %v958_v5 }
 0x32b   : > { %478 = vst [vmem:[%s188_s27 + $0x10] sm:$0xff] %v470_v8  ;;  %479 = vst [vmem:[%s188_s27 + $0x18] sm:$0xff] %v471_v11 }
 0x32c   : > { %476 = vst [vmem:[%s188_s27] sm:$0xff] %v468_v13  ;;  %477 = vst [vmem:[%s188_s27 + $0x8] sm:$0xff] %v469_v14 }
 0x32d   : > { %v461_v15 = vpop.permute.xlu1 %460 }
 0x32e   : > { %v472_v16 = vmul.f32 %v461_v15, %v950_v1  ;;  %v473_v9 = vmul.f32 %v461_v15, %v952_v2 }
 0x330   : > { %480 = vst [vmem:[%s188_s27 + $0x20] sm:$0xff] %v472_v16  ;;  %481 = vst [vmem:[%s188_s27 + $0x28] sm:$0xff] %v473_v9 }
 0x331   : > { %v466_v3 = vpop.permute.xlu1 %465 }
 0x332   : > { %v474_v5 = vmul.f32 %v466_v3, %v960_v6  ;;  %v475_v1 = vmul.f32 %v466_v3, %v962_v7 }
 0x334   : > { %482 = vst [vmem:[%s188_s27 + $0x30] sm:$0xff] %v474_v5  ;;  %483 = vst [vmem:[%s188_s27 + $0x38] sm:$0xff] %v475_v1 }
 0x335   : > { %747 = shalt.err (!%p744_p2)
}
 0x336   : > { %s748_s7 = scalar_lea.hbm %s1007_s10, 1024  ;;  %s752_s19 = scalar_lea.hbm %s1056_s3, 2048 }
 0x337   : > { %p749_p4 = scmp.ne.s32.totalorder %s1007_s10, %s748_s7  ;;  %p753_p9 = scmp.lt.u32.totalorder %s1007_s10, %s1056_s3 }
 0x338   : > { %p754_p1 = scmp.lt.u32.totalorder %s752_s19, %s748_s7  ;;  %p756_p6 = scmp.lt.u32.totalorder %s748_s7, %s1007_s10 }
 0x339   : > { %p750_p5 = pnand %p749_p4, %p1063_p11 }
 0x33a   : > { %p755_p3 = por %p754_p1, %p753_p9 }
 0x33b   : > { %p751_p7 = pneg %p750_p5 }
 0x33c   : > { %p757_p12 = por %p756_p6, %p755_p3 }
 0x33e   : > { %p758_p13 = pnand %p757_p12, %p751_p7 }
 0x340   : > { %761 = shalt.err (!%p758_p13)
}
 0x341   : > { %s810_s26 = smov 256   ;;  %s811_s27 = smov 16  }
 0x342   : > { %634 = dma.vmem_to_hbm [thread:$0]  (%p1063_p11), %s1002_s28, 1024, %s1007_s10, %s485_s16, %s810_s26, %s810_s26, %s811_s27  }
 0x343 PF: > { %s513_s29 = sand.u32 1, %s788_s12   ;;  %p1064_p8 = scmp.ne.s32.totalorder %s1061_s25, 0 }
 0x344   : > { %p1065_p10 = scmp.ge.s32.totalorder %s800_s15, 2  ;;  %s514_s30 = scalar_lea.sflag [#allocation5], %s513_s29 }
 0x346   : > { %p641_p0 = pnand %p1065_p10, %p1064_p8 }
 0x348   : > { %783 = dma.done.wait (!%p641_p0), %s514_s30, 1024  }
 0x349   : > { %785 = vsyncadd (!%p641_p0), %s514_s30, 4294966272  ;;  %p16_p2 = scmp.ge.s32.totalorder %s857_s18, 4   ;;  %s1066_s12 = smov %s792_s13 }
 0x34a   : > { %s1067_s13 = smov %s796_s14  ;;  %s1068_s14 = smov %s869_s21 }
 0x34b   : > { %s1069_s15 = smov %s857_s18  ;;  %18 = sbr.rel (!%p16_p2) target bundleno = 5 (0x5), region = 77 }
 0x352   :  { %519 = vsyncpa [#allocation4], 1 }
 0x353   :  { %521 = vsyncpa [#allocation4 + $0x1], 1 }
 0x354   :  { %522 = vsyncpa [#allocation5], 1 }
 0x355   :  { %524 = vsyncpa [#allocation5 + $0x1], 1 }

</bundles_post_ra>
